<compile_context>
chip_gen: v7x
topology: tpu7x:2x2x1
jax: 0.10.0
libtpu: 0.0.40
codegen_flags: <defaults>
</compile_context>

<pallas_src>
import jax
import jax.numpy as jnp
from jax.experimental import pallas as pl
from jax.experimental.pallas import tpu as pltpu


H1 = 400      # fc1 / decoder-mid width in the PyTorch module
H1_PAD = 512  # padded width: dense vregs, 128-aligned K for the next matmul
H2 = 128


def _round_up(n, m):
    return (n + m - 1) // m * m


def _elu(v):
    # ELU(alpha=1): x if x > 0 else exp(x) - 1   (computed in f32)
    return jnp.where(v > 0.0, v, jnp.exp(jnp.minimum(v, 0.0)) - 1.0)


def vae_kernel(x_ref,
               w1_ref, b1_ref, w2_ref, b2_ref, wh_ref, bh_ref,
               wd1_ref, bd1_ref, wd2_ref, bd2_ref, wd3_ref, bd3_ref,
               xhat_ref, stats_ref):
    L = wd1_ref.shape[0]                                   # latent dim
    x = x_ref[...]                                         # bf16 (tm, D)

    # ---------------- encoder ----------------
    h1 = jnp.dot(x, w1_ref[...], preferred_element_type=jnp.float32) + b1_ref[...]
    h1 = jnp.maximum(h1, 0.0)                              # ReLU (f32)
    h2 = jnp.dot(h1.astype(jnp.bfloat16), w2_ref[...],
                 preferred_element_type=jnp.float32) + b2_ref[...]
    h2 = jnp.maximum(h2, 0.0)

    # fused mean|logvar head: one matmul, one lane-denser (tm, 2L) store
    stats = jnp.dot(h2.astype(jnp.bfloat16), wh_ref[...],
                    preferred_element_type=jnp.float32) + bh_ref[...]
    stats_ref[...] = stats.astype(stats_ref.dtype)

    # ---------------- decoder(mean) ----------------
    mean = stats[:, :L]
    d1 = jnp.dot(mean.astype(jnp.bfloat16), wd1_ref[...],
                 preferred_element_type=jnp.float32) + bd1_ref[...]
    d1 = _elu(d1)
    d2 = jnp.dot(d1.astype(jnp.bfloat16), wd2_ref[...],
                 preferred_element_type=jnp.float32) + bd2_ref[...]
    d2 = _elu(d2)
    xhat = jnp.dot(d2.astype(jnp.bfloat16), wd3_ref[...],
                   preferred_element_type=jnp.float32) + bd3_ref[...]
    xhat_ref[...] = xhat.astype(xhat_ref.dtype)


def vae_apply(x, kp, *, tm=256):
    """Full VAE forward. x: (B, D) f32 -> (x_hat, mean, logvar)."""
    B, D = x.shape
    L = kp["wd1"].shape[0]
    twoL = 2 * L

    # Batch tile: multiple of 8 sublanes, sized for v7x's smaller VMEM too.
    tm = min(tm, _round_up(B, 8))
    Bp = _round_up(B, tm)
    xb = x.astype(jnp.bfloat16)
    if Bp != B:
        xb = jnp.pad(xb, ((0, Bp - B), (0, 0)))

    grid = (Bp // tm,)

    def row_spec(last):
        return pl.BlockSpec((tm, last), lambda i: (i, 0))

    def const_spec(arr):                      # resident in VMEM across all steps
        return pl.BlockSpec(arr.shape, lambda i: (0, 0))

    weights = [kp["w1"], kp["b1"], kp["w2"], kp["b2"], kp["wh"], kp["bh"],
               kp["wd1"], kp["bd1"], kp["wd2"], kp["bd2"], kp["wd3"], kp["bd3"]]

    flops = 2 * Bp * (D * H1_PAD + H1_PAD * H2 + H2 * twoL
                      + L * H2 + H2 * H1_PAD + H1_PAD * D)
    bytes_accessed = (int(xb.size) * 2
                      + sum(int(w.size) * w.dtype.itemsize for w in weights)
                      + Bp * D * 4 + Bp * twoL * 4)
    cost = pl.CostEstimate(flops=int(flops),
                           transcendentals=int(Bp * (H2 + H1_PAD)),
                           bytes_accessed=int(bytes_accessed))

    x_hat, stats = pl.pallas_call(
        vae_kernel,
        out_shape=(jax.ShapeDtypeStruct((Bp, D), jnp.float32),
                   jax.ShapeDtypeStruct((Bp, twoL), jnp.float32)),
        grid=grid,
        in_specs=[row_spec(D)] + [const_spec(w) for w in weights],
        out_specs=(row_spec(D), row_spec(twoL)),
        compiler_params=pltpu.CompilerParams(
            dimension_semantics=("parallel",),
            vmem_limit_bytes=32 * 1024 * 1024),
        cost_estimate=cost,
    )(xb, *weights)

    x_hat = x_hat[:B]
    stats = stats[:B]
    return x_hat, stats[:, :L], stats[:, L:]


def vae_forward(x, kp):
    """Matches VAE.forward: returns x_hat = decoder(encoder_mean(x))."""
    x_hat, _, _ = vae_apply(x, kp)
    return x_hat


def init_params(key, input_dim, latent_dim):
    """PyTorch-Linear-like init (uniform +/- 1/sqrt(fan_in)), weights as (in, out)."""
    def linear(k, fan_in, fan_out):
        kw, kb = jax.random.split(k)
        bound = 1.0 / jnp.sqrt(fan_in)
        w = jax.random.uniform(kw, (fan_in, fan_out), jnp.float32, -bound, bound)
        b = jax.random.uniform(kb, (1, fan_out), jnp.float32, -bound, bound)
        return w, b

    ks = jax.random.split(key, 7)
    w1, b1 = linear(ks[0], input_dim, H1)
    w2, b2 = linear(ks[1], H1, H2)
    wm, bm = linear(ks[2], H2, latent_dim)
    wv, bv = linear(ks[3], H2, latent_dim)
    wd1, bd1 = linear(ks[4], latent_dim, H2)
    wd2, bd2 = linear(ks[5], H2, H1)
    wd3, bd3 = linear(ks[6], H1, input_dim)
    return dict(w1=w1, b1=b1, w2=w2, b2=b2, wm=wm, bm=bm, wv=wv, bv=bv,
                wd1=wd1, bd1=bd1, wd2=wd2, bd2=bd2, wd3=wd3, bd3=bd3)


def pack_params(p):
    """Pad 400->512 with zeros (no leakage through ReLU/zero rows) and cast
    matmul weights to bf16; biases stay f32."""
    def pad_cols(a, to):
        return jnp.pad(a, ((0, 0), (0, to - a.shape[1])))

    def pad_rows(a, to):
        return jnp.pad(a, ((0, to - a.shape[0]), (0, 0)))

    bf = lambda a: a.astype(jnp.bfloat16)
    return {
        "w1": bf(pad_cols(p["w1"], H1_PAD)), "b1": pad_cols(p["b1"], H1_PAD),
        "w2": bf(pad_rows(p["w2"], H1_PAD)), "b2": p["b2"],
        "wh": bf(jnp.concatenate([p["wm"], p["wv"]], axis=1)),
        "bh": jnp.concatenate([p["bm"], p["bv"]], axis=1),
        "wd1": bf(p["wd1"]), "bd1": p["bd1"],
        "wd2": bf(pad_cols(p["wd2"], H1_PAD)), "bd2": pad_cols(p["bd2"], H1_PAD),
        "wd3": bf(pad_rows(p["wd3"], H1_PAD)), "bd3": p["bd3"],
    }


def vae_ref(x, kp):
    """Pure-JAX reference using the same bf16/f32 precision path as the kernel."""
    L = kp["wd1"].shape[0]
    bf = jnp.bfloat16

    def mm(a, w):
        return jnp.dot(a.astype(bf), w, preferred_element_type=jnp.float32)

    h1 = jnp.maximum(mm(x, kp["w1"]) + kp["b1"], 0.0)
    h2 = jnp.maximum(mm(h1, kp["w2"]) + kp["b2"], 0.0)
    stats = mm(h2, kp["wh"]) + kp["bh"]
    mean, logvar = stats[:, :L], stats[:, L:]
    d1 = _elu(mm(mean, kp["wd1"]) + kp["bd1"])
    d2 = _elu(mm(d1, kp["wd2"]) + kp["bd2"])
    x_hat = mm(d2, kp["wd3"]) + kp["bd3"]
    return x_hat, mean, logvar


if __name__ == "__main__":
    key = jax.random.PRNGKey(0)
    k_x, k_p = jax.random.split(key)

    B, input_dim, latent_dim = 16, 64, 8
    x = jax.random.normal(k_x, (B, input_dim), jnp.float32)
    kparams = pack_params(init_params(k_p, input_dim, latent_dim))

    x_hat, mean, logvar = jax.jit(vae_apply)(x, kparams)
    jax.block_until_ready((x_hat, mean, logvar))

    xr, mr, lr = vae_ref(x, kparams)
    assert x_hat.shape == (B, input_dim)
    assert mean.shape == (B, latent_dim) and logvar.shape == (B, latent_dim)
    assert jnp.allclose(mean, mr, atol=2e-2, rtol=2e-2)
    assert jnp.allclose(logvar, lr, atol=2e-2, rtol=2e-2)
    assert jnp.allclose(x_hat, xr, atol=2e-2, rtol=2e-2)

    # forward() semantics: returns only x_hat
    xf = jax.jit(vae_forward)(x, kparams)
    jax.block_until_ready(xf)
    assert jnp.allclose(xf, x_hat, atol=1e-6, rtol=1e-6)

    print("KERNEL_OK")
</pallas_src>

<mosaic_0001>
module attributes {stable_mosaic.version = 11 : i64} {
  func.func @vae_kernel(%arg0: i32, %arg1: memref<16x64xbf16, #tpu.memory_space<vmem>>, %arg2: memref<64x512xbf16, #tpu.memory_space<vmem>>, %arg3: memref<1x512xf32, #tpu.memory_space<vmem>>, %arg4: memref<512x128xbf16, #tpu.memory_space<vmem>>, %arg5: memref<1x128xf32, #tpu.memory_space<vmem>>, %arg6: memref<128x16xbf16, #tpu.memory_space<vmem>>, %arg7: memref<1x16xf32, #tpu.memory_space<vmem>>, %arg8: memref<8x128xbf16, #tpu.memory_space<vmem>>, %arg9: memref<1x128xf32, #tpu.memory_space<vmem>>, %arg10: memref<128x512xbf16, #tpu.memory_space<vmem>>, %arg11: memref<1x512xf32, #tpu.memory_space<vmem>>, %arg12: memref<512x64xbf16, #tpu.memory_space<vmem>>, %arg13: memref<1x64xf32, #tpu.memory_space<vmem>>, %arg14: memref<16x64xf32, #tpu.memory_space<vmem>>, %arg15: memref<16x16xf32, #tpu.memory_space<vmem>>) attributes {dimension_semantics = [#tpu.dimension_semantics<parallel>], iteration_bounds = array<i64: 1>, scalar_prefetch = 0 : i64, scratch_operands = 0 : i64, tpu.core_type = #tpu.core_type<tc>, window_params = [{transform_indices = @transform_0, window_bounds = array<i64: 16, 64>}, {pipeline_mode = #tpu.pipeline_mode<synchronous>, transform_indices = @transform_1, window_bounds = array<i64: 64, 512>}, {pipeline_mode = #tpu.pipeline_mode<synchronous>, transform_indices = @transform_2, window_bounds = array<i64: 1, 512>}, {pipeline_mode = #tpu.pipeline_mode<synchronous>, transform_indices = @transform_3, window_bounds = array<i64: 512, 128>}, {pipeline_mode = #tpu.pipeline_mode<synchronous>, transform_indices = @transform_4, window_bounds = array<i64: 1, 128>}, {pipeline_mode = #tpu.pipeline_mode<synchronous>, transform_indices = @transform_5, window_bounds = array<i64: 128, 16>}, {pipeline_mode = #tpu.pipeline_mode<synchronous>, transform_indices = @transform_6, window_bounds = array<i64: 1, 16>}, {pipeline_mode = #tpu.pipeline_mode<synchronous>, transform_indices = @transform_7, window_bounds = array<i64: 8, 128>}, {pipeline_mode = #tpu.pipeline_mode<synchronous>, transform_indices = @transform_8, window_bounds = array<i64: 1, 128>}, {pipeline_mode = #tpu.pipeline_mode<synchronous>, transform_indices = @transform_9, window_bounds = array<i64: 128, 512>}, {pipeline_mode = #tpu.pipeline_mode<synchronous>, transform_indices = @transform_10, window_bounds = array<i64: 1, 512>}, {pipeline_mode = #tpu.pipeline_mode<synchronous>, transform_indices = @transform_11, window_bounds = array<i64: 512, 64>}, {pipeline_mode = #tpu.pipeline_mode<synchronous>, transform_indices = @transform_12, window_bounds = array<i64: 1, 64>}, {transform_indices = @transform_13, window_bounds = array<i64: 16, 64>}, {transform_indices = @transform_14, window_bounds = array<i64: 16, 16>}]} {
    %c0 = arith.constant 0 : index
    %c0_0 = arith.constant 0 : index
    %0 = vector.load %arg1[%c0, %c0_0] : memref<16x64xbf16, #tpu.memory_space<vmem>>, vector<16x64xbf16>
    %c0_1 = arith.constant 0 : index
    %c0_2 = arith.constant 0 : index
    %1 = vector.load %arg2[%c0_1, %c0_2] : memref<64x512xbf16, #tpu.memory_space<vmem>>, vector<64x512xbf16>
    %cst = arith.constant dense<0.000000e+00> : vector<16x512xf32>
    %2 = tpu.matmul %0, %1, %cst {dimension_numbers = #tpu.dot_dimension_numbers<[1], [0], [0], [1], [0, 0, 1, 1], [], []>} : vector<16x64xbf16>, vector<64x512xbf16>, vector<16x512xf32> -> vector<16x512xf32>
    %c0_3 = arith.constant 0 : index
    %c0_4 = arith.constant 0 : index
    %3 = vector.load %arg3[%c0_3, %c0_4] : memref<1x512xf32, #tpu.memory_space<vmem>>, vector<1x512xf32>
    %4 = vector.broadcast %3 : vector<1x512xf32> to vector<16x512xf32>
    %5 = arith.addf %2, %4 : vector<16x512xf32>
    %cst_5 = arith.constant 0.000000e+00 : f32
    %6 = vector.broadcast %cst_5 : f32 to vector<16x512xf32>
    %7 = arith.maximumf %5, %6 : vector<16x512xf32>
    %8 = arith.truncf %7 : vector<16x512xf32> to vector<16x512xbf16>
    %c0_6 = arith.constant 0 : index
    %c0_7 = arith.constant 0 : index
    %9 = vector.load %arg4[%c0_6, %c0_7] : memref<512x128xbf16, #tpu.memory_space<vmem>>, vector<512x128xbf16>
    %cst_8 = arith.constant dense<0.000000e+00> : vector<16x128xf32>
    %10 = tpu.matmul %8, %9, %cst_8 {dimension_numbers = #tpu.dot_dimension_numbers<[1], [0], [0], [1], [0, 0, 1, 1], [], []>} : vector<16x512xbf16>, vector<512x128xbf16>, vector<16x128xf32> -> vector<16x128xf32>
    %c0_9 = arith.constant 0 : index
    %c0_10 = arith.constant 0 : index
    %11 = vector.load %arg5[%c0_9, %c0_10] : memref<1x128xf32, #tpu.memory_space<vmem>>, vector<1x128xf32>
    %12 = vector.broadcast %11 : vector<1x128xf32> to vector<16x128xf32>
    %13 = arith.addf %10, %12 : vector<16x128xf32>
    %cst_11 = arith.constant 0.000000e+00 : f32
    %14 = vector.broadcast %cst_11 : f32 to vector<16x128xf32>
    %15 = arith.maximumf %13, %14 : vector<16x128xf32>
    %16 = arith.truncf %15 : vector<16x128xf32> to vector<16x128xbf16>
    %c0_12 = arith.constant 0 : index
    %c0_13 = arith.constant 0 : index
    %17 = vector.load %arg6[%c0_12, %c0_13] : memref<128x16xbf16, #tpu.memory_space<vmem>>, vector<128x16xbf16>
    %cst_14 = arith.constant dense<0.000000e+00> : vector<16x16xf32>
    %18 = tpu.matmul %16, %17, %cst_14 {dimension_numbers = #tpu.dot_dimension_numbers<[1], [0], [0], [1], [0, 0, 1, 1], [], []>} : vector<16x128xbf16>, vector<128x16xbf16>, vector<16x16xf32> -> vector<16x16xf32>
    %c0_15 = arith.constant 0 : index
    %c0_16 = arith.constant 0 : index
    %19 = vector.load %arg7[%c0_15, %c0_16] : memref<1x16xf32, #tpu.memory_space<vmem>>, vector<1x16xf32>
    %20 = vector.broadcast %19 : vector<1x16xf32> to vector<16x16xf32>
    %21 = arith.addf %18, %20 : vector<16x16xf32>
    %c0_17 = arith.constant 0 : index
    %c0_18 = arith.constant 0 : index
    %22 = vector.load %arg15[%c0_17, %c0_18] : memref<16x16xf32, #tpu.memory_space<vmem>>, vector<16x16xf32>
    tpu.vector_store %arg15[%c0_17, %c0_18], %21 {strides = array<i32>} : memref<16x16xf32, #tpu.memory_space<vmem>>, vector<16x16xf32>,
    %23 = vector.extract_strided_slice %21 {offsets = [0, 0], sizes = [16, 8], strides = [1, 1]} : vector<16x16xf32> to vector<16x8xf32>
    %24 = arith.truncf %23 : vector<16x8xf32> to vector<16x8xbf16>
    %c0_19 = arith.constant 0 : index
    %c0_20 = arith.constant 0 : index
    %25 = vector.load %arg8[%c0_19, %c0_20] : memref<8x128xbf16, #tpu.memory_space<vmem>>, vector<8x128xbf16>
    %cst_21 = arith.constant dense<0.000000e+00> : vector<16x128xf32>
    %26 = tpu.matmul %24, %25, %cst_21 {dimension_numbers = #tpu.dot_dimension_numbers<[1], [0], [0], [1], [0, 0, 1, 1], [], []>} : vector<16x8xbf16>, vector<8x128xbf16>, vector<16x128xf32> -> vector<16x128xf32>
    %c0_22 = arith.constant 0 : index
    %c0_23 = arith.constant 0 : index
    %27 = vector.load %arg9[%c0_22, %c0_23] : memref<1x128xf32, #tpu.memory_space<vmem>>, vector<1x128xf32>
    %28 = vector.broadcast %27 : vector<1x128xf32> to vector<16x128xf32>
    %29 = arith.addf %26, %28 : vector<16x128xf32>
    %cst_24 = arith.constant 0.000000e+00 : f32
    %30 = vector.broadcast %cst_24 : f32 to vector<16x128xf32>
    %31 = arith.cmpf ogt, %29, %30 : vector<16x128xf32>
    %cst_25 = arith.constant 0.000000e+00 : f32
    %32 = vector.broadcast %cst_25 : f32 to vector<16x128xf32>
    %33 = arith.minimumf %29, %32 : vector<16x128xf32>
    %34 = math.exp %33 : vector<16x128xf32>
    %cst_26 = arith.constant 1.000000e+00 : f32
    %35 = vector.broadcast %cst_26 : f32 to vector<16x128xf32>
    %36 = arith.subf %34, %35 : vector<16x128xf32>
    %37 = arith.select %31, %29, %36 : vector<16x128xi1>, vector<16x128xf32>
    %38 = arith.truncf %37 : vector<16x128xf32> to vector<16x128xbf16>
    %c0_27 = arith.constant 0 : index
    %c0_28 = arith.constant 0 : index
    %39 = vector.load %arg10[%c0_27, %c0_28] : memref<128x512xbf16, #tpu.memory_space<vmem>>, vector<128x512xbf16>
    %cst_29 = arith.constant dense<0.000000e+00> : vector<16x512xf32>
    %40 = tpu.matmul %38, %39, %cst_29 {dimension_numbers = #tpu.dot_dimension_numbers<[1], [0], [0], [1], [0, 0, 1, 1], [], []>} : vector<16x128xbf16>, vector<128x512xbf16>, vector<16x512xf32> -> vector<16x512xf32>
    %c0_30 = arith.constant 0 : index
    %c0_31 = arith.constant 0 : index
    %41 = vector.load %arg11[%c0_30, %c0_31] : memref<1x512xf32, #tpu.memory_space<vmem>>, vector<1x512xf32>
    %42 = vector.broadcast %41 : vector<1x512xf32> to vector<16x512xf32>
    %43 = arith.addf %40, %42 : vector<16x512xf32>
    %cst_32 = arith.constant 0.000000e+00 : f32
    %44 = vector.broadcast %cst_32 : f32 to vector<16x512xf32>
    %45 = arith.cmpf ogt, %43, %44 : vector<16x512xf32>
    %cst_33 = arith.constant 0.000000e+00 : f32
    %46 = vector.broadcast %cst_33 : f32 to vector<16x512xf32>
    %47 = arith.minimumf %43, %46 : vector<16x512xf32>
    %48 = math.exp %47 : vector<16x512xf32>
    %cst_34 = arith.constant 1.000000e+00 : f32
    %49 = vector.broadcast %cst_34 : f32 to vector<16x512xf32>
    %50 = arith.subf %48, %49 : vector<16x512xf32>
    %51 = arith.select %45, %43, %50 : vector<16x512xi1>, vector<16x512xf32>
    %52 = arith.truncf %51 : vector<16x512xf32> to vector<16x512xbf16>
    %c0_35 = arith.constant 0 : index
    %c0_36 = arith.constant 0 : index
    %53 = vector.load %arg12[%c0_35, %c0_36] : memref<512x64xbf16, #tpu.memory_space<vmem>>, vector<512x64xbf16>
    %cst_37 = arith.constant dense<0.000000e+00> : vector<16x64xf32>
    %54 = tpu.matmul %52, %53, %cst_37 {dimension_numbers = #tpu.dot_dimension_numbers<[1], [0], [0], [1], [0, 0, 1, 1], [], []>} : vector<16x512xbf16>, vector<512x64xbf16>, vector<16x64xf32> -> vector<16x64xf32>
    %c0_38 = arith.constant 0 : index
    %c0_39 = arith.constant 0 : index
    %55 = vector.load %arg13[%c0_38, %c0_39] : memref<1x64xf32, #tpu.memory_space<vmem>>, vector<1x64xf32>
    %56 = vector.broadcast %55 : vector<1x64xf32> to vector<16x64xf32>
    %57 = arith.addf %54, %56 : vector<16x64xf32>
    %c0_40 = arith.constant 0 : index
    %c0_41 = arith.constant 0 : index
    %58 = vector.load %arg14[%c0_40, %c0_41] : memref<16x64xf32, #tpu.memory_space<vmem>>, vector<16x64xf32>
    tpu.vector_store %arg14[%c0_40, %c0_41], %57 {strides = array<i32>} : memref<16x64xf32, #tpu.memory_space<vmem>>, vector<16x64xf32>,
    return
  }
  func.func @transform_0(%arg0: i32) -> (i32, i32) {
    %c0_i32 = arith.constant 0 : i32
    %c0_i32_0 = arith.constant 0 : i32
    return %arg0, %c0_i32 : i32, i32
  }
  func.func @transform_1(%arg0: i32) -> (i32, i32) {
    %c0_i32 = arith.constant 0 : i32
    %c0_i32_0 = arith.constant 0 : i32
    %c0_i32_1 = arith.constant 0 : i32
    return %c0_i32, %c0_i32_0 : i32, i32
  }
  func.func @transform_2(%arg0: i32) -> (i32, i32) {
    %c0_i32 = arith.constant 0 : i32
    %c0_i32_0 = arith.constant 0 : i32
    %c0_i32_1 = arith.constant 0 : i32
    return %c0_i32, %c0_i32_0 : i32, i32
  }
  func.func @transform_3(%arg0: i32) -> (i32, i32) {
    %c0_i32 = arith.constant 0 : i32
    %c0_i32_0 = arith.constant 0 : i32
    %c0_i32_1 = arith.constant 0 : i32
    return %c0_i32, %c0_i32_0 : i32, i32
  }
  func.func @transform_4(%arg0: i32) -> (i32, i32) {
    %c0_i32 = arith.constant 0 : i32
    %c0_i32_0 = arith.constant 0 : i32
    %c0_i32_1 = arith.constant 0 : i32
    return %c0_i32, %c0_i32_0 : i32, i32
  }
  func.func @transform_5(%arg0: i32) -> (i32, i32) {
    %c0_i32 = arith.constant 0 : i32
    %c0_i32_0 = arith.constant 0 : i32
    %c0_i32_1 = arith.constant 0 : i32
    return %c0_i32, %c0_i32_0 : i32, i32
  }
  func.func @transform_6(%arg0: i32) -> (i32, i32) {
    %c0_i32 = arith.constant 0 : i32
    %c0_i32_0 = arith.constant 0 : i32
    %c0_i32_1 = arith.constant 0 : i32
    return %c0_i32, %c0_i32_0 : i32, i32
  }
  func.func @transform_7(%arg0: i32) -> (i32, i32) {
    %c0_i32 = arith.constant 0 : i32
    %c0_i32_0 = arith.constant 0 : i32
    %c0_i32_1 = arith.constant 0 : i32
    return %c0_i32, %c0_i32_0 : i32, i32
  }
  func.func @transform_8(%arg0: i32) -> (i32, i32) {
    %c0_i32 = arith.constant 0 : i32
    %c0_i32_0 = arith.constant 0 : i32
    %c0_i32_1 = arith.constant 0 : i32
    return %c0_i32, %c0_i32_0 : i32, i32
  }
  func.func @transform_9(%arg0: i32) -> (i32, i32) {
    %c0_i32 = arith.constant 0 : i32
    %c0_i32_0 = arith.constant 0 : i32
    %c0_i32_1 = arith.constant 0 : i32
    return %c0_i32, %c0_i32_0 : i32, i32
  }
  func.func @transform_10(%arg0: i32) -> (i32, i32) {
    %c0_i32 = arith.constant 0 : i32
    %c0_i32_0 = arith.constant 0 : i32
    %c0_i32_1 = arith.constant 0 : i32
    return %c0_i32, %c0_i32_0 : i32, i32
  }
  func.func @transform_11(%arg0: i32) -> (i32, i32) {
    %c0_i32 = arith.constant 0 : i32
    %c0_i32_0 = arith.constant 0 : i32
    %c0_i32_1 = arith.constant 0 : i32
    return %c0_i32, %c0_i32_0 : i32, i32
  }
  func.func @transform_12(%arg0: i32) -> (i32, i32) {
    %c0_i32 = arith.constant 0 : i32
    %c0_i32_0 = arith.constant 0 : i32
    %c0_i32_1 = arith.constant 0 : i32
    return %c0_i32, %c0_i32_0 : i32, i32
  }
  func.func @transform_13(%arg0: i32) -> (i32, i32) {
    %c0_i32 = arith.constant 0 : i32
    %c0_i32_0 = arith.constant 0 : i32
    return %arg0, %c0_i32 : i32, i32
  }
  func.func @transform_14(%arg0: i32) -> (i32, i32) {
    %c0_i32 = arith.constant 0 : i32
    %c0_i32_0 = arith.constant 0 : i32
    return %arg0, %c0_i32 : i32, i32
  }
}

</mosaic_0001>

<bundles_post_ra>
// kernel: vae_apply.1
= control target key start
LH: loop header
LB: loop body
LE: loop exit
PB: predicated region body
PF: predicated region fallthrough
CT: control target
= control target key end

     0   :  { %20 = vsyncpa [#allocation3], 0  ;;  %s2817_s0 = inlined_call_operand.vmem [shape: bf16[16,64], index: 0, kind: input, shape index: {}]   ;;  %s2818_s1 = inlined_call_operand.hbm [shape: bf16[64,512], index: 1, kind: input, shape index: {}]   ;;  %s2819_s2 = inlined_call_operand.hbm [shape: f32[1,512], index: 2, kind: input, shape index: {}]   ;;  %s2820_s3 = inlined_call_operand.vmem [shape: bf16[512,128], index: 3, kind: input, shape index: {}]   ;;  %s2821_s4 = inlined_call_operand.vmem [shape: f32[1,128], index: 4, kind: input, shape index: {}]   ;;  %s2822_s5 = inlined_call_operand.vmem [shape: bf16[128,16], index: 5, kind: input, shape index: {}]   ;;  %s2823_s6 = inlined_call_operand.hbm [shape: f32[1,16], index: 6, kind: input, shape index: {}]   ;;  %s2824_s7 = inlined_call_operand.hbm [shape: bf16[8,128], index: 7, kind: input, shape index: {}]   ;;  %s2825_s8 = inlined_call_operand.hbm [shape: f32[1,128], index: 8, kind: input, shape index: {}]   ;;  %s2826_s9 = inlined_call_operand.vmem [shape: bf16[128,512], index: 9, kind: input, shape index: {}]   ;;  %s2827_s10 = inlined_call_operand.hbm [shape: f32[1,512], index: 10, kind: input, shape index: {}]   ;;  %s2828_s11 = inlined_call_operand.vmem [shape: bf16[512,64], index: 11, kind: input, shape index: {}]   ;;  %s2829_s12 = inlined_call_operand.hbm [shape: f32[1,64], index: 12, kind: input, shape index: {}]   ;;  %s2830_s13 = inlined_call_operand.hbm [shape: f32[16,64], index: 13, kind: output, shape index: {0}]   ;;  %s2831_s14 = inlined_call_operand.vmem [shape: f32[16,16], index: 14, kind: output, shape index: {1}]  }
   0x1   :  { %21 = vsyncpa [#allocation6], 0 }
   0x2   :  { %22 = vsyncpa [#allocation9], 0 }
   0x3   :  { %23 = vsyncpa [#allocation12], 0 }
   0x4   :  { %24 = vsyncpa [#allocation4], 0  ;;  %s2244_s29 = smov [#allocation5]   ;;  %s2245_s15 = smov [#allocation8]  }
   0x5   :  { %s45_s30 = sshll.u32 %s2244_s29, 4  ;;  %s71_s16 = sshll.u32 %s2245_s15, 4  ;;  %s46_s30 = int_to_ptr.vmem [resolvable:$true] %s45_s30  ;;  %s72_s16 = int_to_ptr.vmem [resolvable:$true] %s71_s16 }
   0x6   :  { %s2058_s19 = scalar_lea.hbm %s2819_s2, 64 }
   0x7   :  { %p2059_p0 = scmp.ne.s32.totalorder %s2819_s2, %s2058_s19  ;;  %p2062_p1 = scmp.lt.u32.totalorder %s2058_s19, %s2819_s2 }
   0x9   :  { %p2064_p2 = pnand %p2062_p1, %p2059_p0 }
   0xb   :  { %2067 = shalt.err (!%p2064_p2)
}
   0xc   :  { %s2068_s24 = scalar_lea.vmem %s46_s30, 64  ;;  %p2073_p4 = scmp.lt.s32.totalorder %s46_s30, %s46_s30 }
   0xd   :  { %p2069_p3 = scmp.ne.s32.totalorder %s46_s30, %s2068_s24  ;;  %p2074_p5 = scmp.lt.s32.totalorder %s2068_s24, %s2068_s24 }
   0xf   :  { %p2075_p6 = por %p2074_p5, %p2073_p4 }
  0x11   :  { %p2076_p7 = pnand %p2075_p6, %p2069_p3 }
  0x13   :  { %2079 = shalt.err (!%p2076_p7)
}
  0x14   :  { %48 = dma.hbm_to_vmem [thread:$0]  %s2819_s2, 64, %s46_s30, [#allocation6]  }
  0x15   :  { %s2080_s29 = scalar_lea.hbm %s2824_s7, 64 }
  0x16   :  { %p2081_p8 = scmp.ne.s32.totalorder %s2824_s7, %s2080_s29  ;;  %p2084_p9 = scmp.lt.u32.totalorder %s2080_s29, %s2824_s7 }
  0x18   :  { %p2086_p10 = pnand %p2084_p9, %p2081_p8 }
  0x1a   :  { %2089 = shalt.err (!%p2086_p10)
}
  0x1b   :  { %s2090_s20 = scalar_lea.vmem %s72_s16, 64  ;;  %p2095_p12 = scmp.lt.s32.totalorder %s72_s16, %s72_s16 }
  0x1c   :  { %p2091_p11 = scmp.ne.s32.totalorder %s72_s16, %s2090_s20  ;;  %p2096_p13 = scmp.lt.s32.totalorder %s2090_s20, %s2090_s20 }
  0x1e   :  { %p2097_p0 = por %p2096_p13, %p2095_p12 }
  0x20   :  { %p2098_p1 = pnand %p2097_p0, %p2091_p11 }
  0x22   :  { %2101 = shalt.err (!%p2098_p1)
}
  0x23   :  { %74 = dma.hbm_to_vmem [thread:$0]  %s2824_s7, 64, %s72_s16, [#allocation9]  }
  0x24   :  { %s2246_s21 = smov [#allocation11]   ;;  %s2247_s23 = smov [#allocation2]  }
  0x25   :  { %s93_s22 = sshll.u32 %s2246_s21, 4  ;;  %s32_s24 = sshll.u32 %s2247_s23, 4  ;;  %s94_s22 = int_to_ptr.vmem [resolvable:$true] %s93_s22  ;;  %s2358_s24 = int_to_ptr.vmem [resolvable:$true] %s32_s24 }
  0x26   :  { %s2102_s27 = scalar_lea.hbm %s2827_s10, 64 }
  0x27   :  { %p2103_p2 = scmp.ne.s32.totalorder %s2827_s10, %s2102_s27  ;;  %p2106_p3 = scmp.lt.u32.totalorder %s2102_s27, %s2827_s10 }
  0x29   :  { %p2108_p4 = pnand %p2106_p3, %p2103_p2 }
  0x2b   :  { %2111 = shalt.err (!%p2108_p4)
}
  0x2c   :  { %s2112_s7 = scalar_lea.vmem %s94_s22, 64  ;;  %p2117_p6 = scmp.lt.s32.totalorder %s94_s22, %s94_s22 }
  0x2d   :  { %p2113_p5 = scmp.ne.s32.totalorder %s94_s22, %s2112_s7  ;;  %p2118_p7 = scmp.lt.s32.totalorder %s2112_s7, %s2112_s7 }
  0x2f   :  { %p2119_p8 = por %p2118_p7, %p2117_p6 }
  0x31   :  { %p2120_p9 = pnand %p2119_p8, %p2113_p5 }
  0x33   :  { %2123 = shalt.err (!%p2120_p9)
}
  0x34   :  { %96 = dma.hbm_to_vmem [thread:$0]  %s2827_s10, 64, %s94_s22, [#allocation12]  }
  0x35   :  { %s2124_s2 = scalar_lea.hbm %s2818_s1, 2048 }
  0x36   :  { %p2125_p10 = scmp.ne.s32.totalorder %s2818_s1, %s2124_s2  ;;  %p2128_p11 = scmp.lt.u32.totalorder %s2124_s2, %s2818_s1 }
  0x38   :  { %p2130_p12 = pnand %p2128_p11, %p2125_p10 }
  0x3a   :  { %2133 = shalt.err (!%p2130_p12)
}
  0x3b   :  { %s2134_s26 = scalar_lea.vmem %s2358_s24, 2048  ;;  %p2139_p0 = scmp.lt.s32.totalorder %s2358_s24, %s2358_s24 }
  0x3c   :  { %p2135_p13 = scmp.ne.s32.totalorder %s2358_s24, %s2134_s26  ;;  %p2140_p1 = scmp.lt.s32.totalorder %s2134_s26, %s2134_s26 }
  0x3e   :  { %p2141_p2 = por %p2140_p1, %p2139_p0 }
  0x40   :  { %p2142_p3 = pnand %p2141_p2, %p2135_p13 }
  0x42   :  { %2145 = shalt.err (!%p2142_p3)
}
  0x43   :  { %s2248_s10 = smov 256   ;;  %s2249_s22 = smov 16  }
  0x44   :  { %38 = dma.hbm_to_vmem [thread:$0]  %s2818_s1, 2048, %s2358_s24, [#allocation3], %s2248_s10, %s2248_s10, %s2249_s22  }
  0x45   :  { %s2250_s29 = smov [#allocation7]   ;;  %s2251_s17 = smov [#allocation10]  }
  0x46   :  { %s61_s15 = sshll.u32 %s2250_s29, 4  ;;  %s81_s7 = sshll.u32 %s2251_s17, 4  ;;  %s62_s15 = int_to_ptr.vmem [resolvable:$true] %s61_s15  ;;  %s82_s7 = int_to_ptr.vmem [resolvable:$true] %s81_s7 }
  0x47   :  { %s2146_s19 = scalar_lea.hbm %s2823_s6, 16 }
  0x48   :  { %p2147_p4 = scmp.ne.s32.totalorder %s2823_s6, %s2146_s19  ;;  %p2150_p5 = scmp.lt.u32.totalorder %s2146_s19, %s2823_s6 }
  0x4a   :  { %p2152_p6 = pnand %p2150_p5, %p2147_p4 }
  0x4c   :  { %2155 = shalt.err (!%p2152_p6)
}
  0x4d   :  { %s2156_s1 = scalar_lea.vmem %s62_s15, 16  ;;  %s2160_s24 = scalar_lea.vmem %s62_s15, 32 }
  0x4e   :  { %p2157_p7 = scmp.ne.s32.totalorder %s62_s15, %s2156_s1  ;;  %p2161_p8 = scmp.lt.s32.totalorder %s62_s15, %s62_s15 }
  0x4f   :  { %p2162_p9 = scmp.lt.s32.totalorder %s2160_s24, %s2156_s1 }
  0x51   :  { %p2163_p10 = por %p2162_p9, %p2161_p8 }
  0x53   :  { %p2164_p11 = pnand %p2163_p10, %p2157_p7 }
  0x55   :  { %2167 = shalt.err (!%p2164_p11)
}
  0x56   :  { %64 = dma.hbm_to_vmem [thread:$0]  %s2823_s6, 16, %s62_s15, [#allocation6]  }
  0x57   :  { %s2168_s22 = scalar_lea.hbm %s2825_s8, 16 }
  0x58   :  { %p2169_p12 = scmp.ne.s32.totalorder %s2825_s8, %s2168_s22  ;;  %p2172_p13 = scmp.lt.u32.totalorder %s2168_s22, %s2825_s8 }
  0x5a   :  { %p2174_p0 = pnand %p2172_p13, %p2169_p12 }
  0x5c   :  { %2177 = shalt.err (!%p2174_p0)
}
  0x5d   :  { %s2178_s16 = scalar_lea.vmem %s82_s7, 16  ;;  %s2182_s18 = scalar_lea.vmem %s82_s7, 32 }
  0x5e   :  { %p2179_p1 = scmp.ne.s32.totalorder %s82_s7, %s2178_s16  ;;  %p2183_p2 = scmp.lt.s32.totalorder %s82_s7, %s82_s7 }
  0x5f   :  { %p2184_p3 = scmp.lt.s32.totalorder %s2182_s18, %s2178_s16 }
  0x61   :  { %p2185_p4 = por %p2184_p3, %p2183_p2 }
  0x63   :  { %p2186_p5 = pnand %p2185_p4, %p2179_p1 }
  0x65   :  { %2189 = shalt.err (!%p2186_p5)
}
  0x66   :  { %84 = dma.hbm_to_vmem [thread:$0]  %s2825_s8, 16, %s82_s7, [#allocation9]  }
  0x67   :  { %s2252_s19 = smov [#allocation13]   ;;  %s2190_s21 = scalar_lea.hbm %s2829_s12, 16 }
  0x68   :  { %s105_s20 = sshll.u32 %s2252_s19, 4  ;;  %p2191_p6 = scmp.ne.s32.totalorder %s2829_s12, %s2190_s21  ;;  %s106_s20 = int_to_ptr.vmem [resolvable:$true] %s105_s20 }
  0x69   :  { %p2194_p7 = scmp.lt.u32.totalorder %s2190_s21, %s2829_s12 }
  0x6b   :  { %p2196_p8 = pnand %p2194_p7, %p2191_p6 }
  0x6d   :  { %2199 = shalt.err (!%p2196_p8)
}
  0x6e   :  { %s2200_s26 = scalar_lea.vmem %s106_s20, 16  ;;  %s2204_s8 = scalar_lea.vmem %s106_s20, 32 }
  0x6f   :  { %p2201_p9 = scmp.ne.s32.totalorder %s106_s20, %s2200_s26  ;;  %p2205_p10 = scmp.lt.s32.totalorder %s106_s20, %s106_s20 }
  0x70   :  { %p2206_p11 = scmp.lt.s32.totalorder %s2204_s8, %s2200_s26 }
  0x72   :  { %p2207_p12 = por %p2206_p11, %p2205_p10 }
  0x74   :  { %p2208_p13 = pnand %p2207_p12, %p2201_p9 }
  0x76   :  { %2211 = shalt.err (!%p2208_p13)
}
  0x77   :  { %108 = dma.hbm_to_vmem [thread:$0]  %s2829_s12, 16, %s106_s20, [#allocation12]  }
  0x78   :  { %2234 = dma.done.wait [#allocation3], 2048  }
  0x79   :  { %2235 = vsyncadd [#allocation3], 4294965248 }
  0x7a   :  { %2236 = dma.done.wait [#allocation6], 80  }
  0x7b   :  { %2237 = vsyncadd [#allocation6], 4294967216 }
  0x7c   :  { %2238 = dma.done.wait [#allocation9], 80  }
  0x7d   :  { %2239 = vsyncadd [#allocation9], 4294967216 }
  0x7e   :  { %2240 = dma.done.wait [#allocation12], 80  }
  0x7f   :  { %2241 = vsyncadd [#allocation12], 4294967216  ;;  %v2253_v0 = vmov 0   ;;  %v1893_v1 = vld [vmem:[#allocation2 + $0x4] ss:$16 sps:$4 sm:$0xff]   ;;  %vm256_vm0 = vcmask 523264   ;;  %v151_v51 = vlaneseq }
  0x80   :  { %292 = vmatprep.mubr.bf16.mxu1 %v2253_v0  ;;  %v1895_v2 = vld [vmem:[#allocation2] ss:$16 sps:$4 sm:$0xff]   ;;  %260 = vmatprep.subr.bf16.mxu1 %v1893_v1  ;;  %v1896_v3 = vld [vmem:[#allocation2 + $0x24] ss:$16 sps:$4 sm:$0xff]   ;;  %v1908_v9 = vld [vmem:[#allocation2 + $0xc] ss:$16 sps:$4 sm:$0xff]  }
  0x81   :  { %261 = vmatpush1.bf16.msra.mxu1 %v1895_v2  ;;  %v1898_v4 = vld [vmem:[#allocation2 + $0x20] ss:$16 sps:$4 sm:$0xff]   ;;  %v1899_v5 = vld [vmem:[#allocation2 + $0x44] ss:$16 sps:$4 sm:$0xff]   ;;  %v1906_v12 = vld [vmem:[#allocation2 + $0x8] ss:$16 sps:$4 sm:$0xff]  }
  0x82   :  { %262 = vmatprep.subr.bf16.mxu1 %v1896_v3  ;;  %v1901_v6 = vld [vmem:[#allocation2 + $0x40] ss:$16 sps:$4 sm:$0xff]   ;;  %v1902_v7 = vld [vmem:[#allocation2 + $0x64] ss:$16 sps:$4 sm:$0xff]   ;;  %v1920_v14 = vld [vmem:[%s2820_s3 + $0x48] sm:$0xff]   ;;  %v2254_v50 = vmov 0.0  }
  0x83   :  { %v1904_v8 = vld [vmem:[#allocation2 + $0x60] ss:$16 sps:$4 sm:$0xff]   ;;  %v1911_v15 = vld [vmem:[#allocation2 + $0x2c] ss:$16 sps:$4 sm:$0xff]   ;;  %v1909_v18 = vld [vmem:[#allocation2 + $0x28] ss:$16 sps:$4 sm:$0xff]  }
  0x84   :  { %v1905_v10 = vld [vmem:[%s2817_s0] sm:$0xff]   ;;  %v1921_v16 = vld [vmem:[%s2820_s3 + $0x8] sm:$0xff]   ;;  %v1922_v17 = vld [vmem:[%s2820_s3 + $0x50] sm:$0xff]   ;;  %v2530_v52 = vshrl.u32 %v151_v51, 7  ;;  %vm2255_vm1 = vmmov 0   ;;  %vm834_vm2 = vcmask 1043456  }
  0x85   :  { %263 = vmatpush1.bf16.msra.mxu1 %v1898_v4  ;;  %v1918_v11 = vld [vmem:[%s2820_s3 + $0x40] sm:$0xff]   ;;  %v1914_v19 = vld [vmem:[#allocation2 + $0x4c] ss:$16 sps:$4 sm:$0xff]   ;;  %v1923_v20 = vld [vmem:[%s2820_s3 + $0x10] sm:$0xff]   ;;  %vm818_vm3 = vcmask 130048   ;;  %vm830_vm4 = vcmask 64512  }
  0x86   :  { %264 = vmatprep.subr.bf16.mxu1 %v1899_v5  ;;  %v1919_v13 = vld [vmem:[%s2820_s3] sm:$0xff]   ;;  %1753 = vmatprep.subr.bf16.mxu0 %v1918_v11  ;;  %v1924_v21 = vld [vmem:[%s2820_s3 + $0x58] sm:$0xff]   ;;  %v1930_v29 = vld [vmem:[%s2820_s3 + $0x68] sm:$0xff]   ;;  %v153_v53 = vsub.s32 0, %v2530_v52  ;;  %v157_v55 = vsub.s32 1, %v2530_v52  ;;  %v165_v11 = vsub.s32 3, %v2530_v52 }
  0x87   :  { %1754 = vmatpush3.bf16.msra.mxu0 %v1919_v13  ;;  %v1912_v22 = vld [vmem:[#allocation2 + $0x48] ss:$16 sps:$4 sm:$0xff]   ;;  %v1917_v23 = vld [vmem:[#allocation2 + $0x6c] ss:$16 sps:$4 sm:$0xff]   ;;  %v1926_v26 = vld [vmem:[%s2820_s3 + $0x60] sm:$0xff]  }
  0x88   :  { %1755 = vmatprep.subr.bf16.mxu0 %v1920_v14  ;;  %v1925_v24 = vld [vmem:[%s2820_s3 + $0x18] sm:$0xff]   ;;  %v1927_v27 = vld [vmem:[%s2820_s3 + $0xc0] sm:$0xff]   ;;  %v1931_v31 = vld [vmem:[%s2820_s3 + $0xc8] sm:$0xff]  }
  0x89   :  { %265 = vmatpush1.bf16.msra.mxu1 %v1901_v6  ;;  %v1915_v25 = vld [vmem:[#allocation2 + $0x68] ss:$16 sps:$4 sm:$0xff]   ;;  %v1928_v28 = vld [vmem:[%s2820_s3 + $0x20] sm:$0xff]   ;;  %v1934_v34 = vld [vmem:[%s2820_s3 + $0x70] sm:$0xff]  }
  0x8a   :  { %266 = vmatprep.subr.bf16.mxu1 %v1902_v7  ;;  %v1929_v30 = vld [vmem:[%s2820_s3 + $0x80] sm:$0xff]   ;;  %v1932_v32 = vld [vmem:[%s2820_s3 + $0x28] sm:$0xff]   ;;  %v1935_v35 = vld [vmem:[%s2820_s3 + $0xd0] sm:$0xff]  }
  0x8b   :  { %1756 = vmatpush3.bf16.msra.mxu0 %v1921_v16  ;;  %v1933_v33 = vld [vmem:[%s2820_s3 + $0x88] sm:$0xff]   ;;  %v1936_v36 = vld [vmem:[%s2820_s3 + $0x30] sm:$0xff]   ;;  %v1938_v38 = vld [vmem:[%s2820_s3 + $0x78] sm:$0xff]  }
  0x8c   :  { %1757 = vmatprep.subr.bf16.mxu0 %v1922_v17  ;;  %v1937_v37 = vld [vmem:[%s2820_s3 + $0x90] sm:$0xff]   ;;  %v1939_v39 = vld [vmem:[%s2820_s3 + $0xd8] sm:$0xff]   ;;  %v1942_v42 = vld [vmem:[%s2820_s3 + $0xe0] sm:$0xff]  }
  0x8d   :  { %267 = vmatpush1.bf16.msra.mxu1 %v1904_v8  ;;  %v1940_v40 = vld [vmem:[%s2820_s3 + $0x38] sm:$0xff]   ;;  %v1943_v43 = vld [vmem:[%s2820_s3 + $0xa0] sm:$0xff]   ;;  %v1944_v44 = vld [vmem:[%s2820_s3 + $0xe8] sm:$0xff]  }
  0x8e   :  { %303 = vmatprep.subr.bf16.mxu1 %v1908_v9  ;;  %v1941_v41 = vld [vmem:[%s2820_s3 + $0x98] sm:$0xff]   ;;  %v1945_v45 = vld [vmem:[%s2820_s3 + $0xa8] sm:$0xff]   ;;  %v1946_v46 = vld [vmem:[%s2820_s3 + $0xf0] sm:$0xff]  }
  0x8f   :  { %1758 = vmatpush3.bf16.msra.mxu0 %v1923_v20  ;;  %v1947_v47 = vld [vmem:[%s2820_s3 + $0xb0] sm:$0xff]   ;;  %v1948_v48 = vld [vmem:[%s2820_s3 + $0xf8] sm:$0xff]   ;;  %v149_v54 = vld [vmem:[#allocation5] sm:$0xf] }
  0x90   :  { %1632 = vmatmul.mubr.msk.bf16.vlgmr.msra.gmra.mrb[0].mxu1 %vm256_vm0, %v1905_v10  ;;  %1759 = vmatprep.subr.bf16.mxu0 %v1924_v21  ;;  %v1949_v49 = vld [vmem:[%s2820_s3 + $0xb8] sm:$0xff]   ;;  %v154_v56 = vrot.slane %v149_v54, %v153_v53  ;;  %v158_v57 = vrot.slane %v149_v54, %v157_v55  ;;  %v1950_v9 = vld [vmem:[%s2822_s5] sm:$0xff]   ;;  %v166_v13 = vrot.slane %v149_v54, %v165_v11 }
  0x91   :  { %304 = vmatpush1.bf16.msra.mxu1 %v1906_v12  ;;  %335 = vmatprep.mubr.bf16.mxu1 %v2253_v0 }
  0x92   :  { %305 = vmatprep.subr.bf16.mxu1 %v1911_v15 }
  0x93   :  { %1760 = vmatpush3.bf16.msra.mxu0 %v1925_v24 }
  0x94   :  { %1761 = vmatprep.subr.bf16.mxu0 %v1926_v26 }
  0x95   :  { %306 = vmatpush1.bf16.msra.mxu1 %v1909_v18 }
  0x96   :  { %307 = vmatprep.subr.bf16.mxu1 %v1914_v19 }
  0x97   :  { %1762 = vmatpush3.bf16.msra.mxu0 %v1928_v28  ;;  %v1951_v28 = vld [vmem:[%s2822_s5 + $0x8] sm:$0xff]  }
  0x98   :  { %1763 = vmatprep.subr.bf16.mxu0 %v1930_v29  ;;  %v1952_v29 = vld [vmem:[%s2822_s5 + $0x10] sm:$0xff]  }
  0x99   :  { %308 = vmatpush1.bf16.msra.mxu1 %v1912_v22 }
  0x9a   :  { %309 = vmatprep.subr.bf16.mxu1 %v1917_v23 }
  0x9b   :  { %1764 = vmatpush3.bf16.msra.mxu0 %v1932_v32  ;;  %v1955_v32 = vld [vmem:[%s2822_s5 + $0x28] sm:$0xff]  }
  0x9c   :  { %1765 = vmatprep.subr.bf16.mxu0 %v1934_v34  ;;  %v1957_v34 = vld [vmem:[%s2822_s5 + $0x38] sm:$0xff]  }
  0x9d   :  { %310 = vmatpush1.bf16.msra.mxu1 %v1915_v25 }
  0x9e   :  { %1775 = vmatprep.subr.bf16.mxu1 %v1927_v27 }
  0x9f   :  { %1766 = vmatpush3.bf16.msra.mxu0 %v1936_v36 }
  0xa0   :  { %1633 = vmatmul.mubr.msk.bf16.vlgmr.msra.gmra.mrb[4].mxu1 %vm256_vm0, %v1905_v10  ;;  %1767 = vmatprep.subr.bf16.mxu0 %v1938_v38  ;;  %v161_v10 = vsub.s32 2, %v2530_v52 }
  0xa1   :  { %1776 = vmatpush3.bf16.msra.mxu1 %v1929_v30  ;;  %v1953_v30 = vld [vmem:[%s2822_s5 + $0x18] sm:$0xff]  }
  0xa2   :  { %1777 = vmatprep.subr.bf16.mxu1 %v1931_v31  ;;  %v162_v12 = vrot.slane %v149_v54, %v161_v10  ;;  %v1954_v31 = vld [vmem:[%s2822_s5 + $0x20] sm:$0xff]  }
  0xa3   :  { %1768 = vmatpush3.bf16.msra.mxu0 %v1940_v40 }
  0xa4   :  { %1852 = vmatprep.subr.bf16.mxu0 %v2254_v50 }
  0xa5   :  { %1778 = vmatpush3.bf16.msra.mxu1 %v1933_v33  ;;  %v1956_v33 = vld [vmem:[%s2822_s5 + $0x30] sm:$0xff]  }
  0xa6   :  { %1779 = vmatprep.subr.bf16.mxu1 %v1935_v35  ;;  %v822_v35 = vld [vmem:[#allocation8] sm:$0xf] }
  0xa7   :  { %v836_v36 = vsel %vm834_vm2, %v822_v35, 0  ;;  %v2005_v35 = vld [vmem:[%s2826_s9 + $0xec] ss:$16 sps:$4 sm:$0xff]  }
  0xa9   :  { %1780 = vmatpush3.bf16.msra.mxu1 %v1937_v37 }
  0xaa   :  { %1781 = vmatprep.subr.bf16.mxu1 %v1939_v39 }
  0xad   :  { %1782 = vmatpush3.bf16.msra.mxu1 %v1941_v41 }
  0xae   :  { %1783 = vmatprep.subr.bf16.mxu1 %v1942_v42 }
  0xb1   :  { %1784 = vmatpush3.bf16.msra.mxu1 %v1943_v43  ;;  %v1634_v43 = vld [vmem:[%s2821_s4] ss:$0 sm:$0xff] }
  0xb2   :  { %1785 = vmatprep.subr.bf16.mxu1 %v1944_v44 }
  0xb5   :  { %1786 = vmatpush3.bf16.msra.mxu1 %v1945_v45 }
  0xb6   :  { %1787 = vmatprep.subr.bf16.mxu1 %v1946_v46 }
  0xb9   :  { %1788 = vmatpush3.bf16.msra.mxu1 %v1947_v47 }
  0xba   :  { %1789 = vmatprep.subr.bf16.mxu1 %v1948_v48 }
  0xbd   :  { %1790 = vmatpush3.bf16.msra.mxu1 %v1949_v49 }
  0xbe   :  { %1872 = vmatprep.subr.bf16.mxu1 %v2254_v50 }
 0x163   :  { %v294_v58 = vpop.f32.mrb[0].mxu1 }
 0x164   :  { %v295_v59 = vadd.f32 %v294_v58, %v154_v56  ;;  %v296_v60 = vpop.f32.mrb[1].mxu1 }
 0x165   :  { %v297_v61 = vadd.f32 %v296_v60, %v158_v57  ;;  %v298_v62 = vpop.f32.mrb[2].mxu1  ;;  %v1960_v60 = vld [vmem:[%s2826_s9 + $0x4] ss:$16 sps:$4 sm:$0xff]  }
 0x166   :  { %v346_v63 = vmax.f32 %v295_v59, 0.0  ;;  %v299_v1 = vadd.f32 %v298_v62, %v154_v56  ;;  %v300_v2 = vpop.f32.mrb[3].mxu1  ;;  %v1963_v62 = vld [vmem:[%s2826_s9 + $0xc] ss:$16 sps:$4 sm:$0xff]  }
 0x167   :  { %v301_v3 = vadd.f32 %v300_v2, %v158_v57  ;;  %v347_v5 = vmax.f32 %v297_v61, 0.0  ;;  %v1961_v61 = vld [vmem:[%s2826_s9 + $0x8] ss:$16 sps:$4 sm:$0xff]   ;;  %v1667_v2 = vld [vmem:[#allocation7] ss:$0 sm:$0xff] }
 0x168   :  { %v350_v4 = vmax.f32 %v299_v1, 0.0  ;;  %v1967_v1 = vld [vmem:[%s2826_s9 + $0x28] ss:$16 sps:$4 sm:$0xff]  }
 0x169   :  { %v351_v6 = vmax.f32 %v301_v3, 0.0 }
 0x16a   :  { %v354_v7 = vpack.c.bf16 %v350_v4, %v346_v63  ;;  %v1969_v63 = vld [vmem:[%s2826_s9 + $0x2c] ss:$16 sps:$4 sm:$0xff]  }
 0x16b   :  { %v355_v8 = vpack.c.bf16 %v351_v6, %v347_v5 }
 0x16d   :  { %653 = vmatprep.mubr.bf16.mxu0 %v355_v8 }
 0x16e   :  { %654 = vmatmul.mubr.bf16.vlgmr.msra.gmra.mrb[0].mxu0 %v354_v7 }
 0x16f   :  { %1853 = vmatpush3.bf16.msra.mxu0 %v1950_v9  ;;  %1868 = vmatprep.mubr.msk.bf16.mxu0 %vm2255_vm1, %v2254_v50  ;;  %v1958_v9 = vld [vmem:[%s2826_s9] ss:$16 sps:$4 sm:$0xff]  }
 0x170   :  { %1854 = vmatprep.subr.bf16.mxu0 %v2254_v50 }
 0x173   :  { %v337_v14 = vpop.f32.mrb[4].mxu1  ;;  %1855 = vmatpush3.bf16.msra.mxu0 %v1951_v28  ;;  %v1988_v28 = vld [vmem:[%s2826_s9 + $0xa0] ss:$16 sps:$4 sm:$0xff]  }
 0x174   :  { %v338_v15 = vadd.f32 %v337_v14, %v162_v12  ;;  %v339_v16 = vpop.f32.mrb[5].mxu1  ;;  %1856 = vmatprep.subr.bf16.mxu0 %v2254_v50  ;;  %v1964_v14 = vld [vmem:[%s2826_s9 + $0x20] ss:$16 sps:$4 sm:$0xff]  }
 0x175   :  { %v340_v17 = vadd.f32 %v339_v16, %v166_v13  ;;  %v341_v18 = vpop.f32.mrb[6].mxu1  ;;  %v1975_v16 = vld [vmem:[%s2826_s9 + $0x4c] ss:$16 sps:$4 sm:$0xff]  }
 0x176   :  { %v342_v19 = vadd.f32 %v341_v18, %v162_v12  ;;  %v343_v20 = vpop.f32.mrb[7].mxu1  ;;  %v348_v22 = vmax.f32 %v338_v15, 0.0  ;;  %v1972_v15 = vld [vmem:[%s2826_s9 + $0x44] ss:$16 sps:$4 sm:$0xff]   ;;  %v1973_v18 = vld [vmem:[%s2826_s9 + $0x48] ss:$16 sps:$4 sm:$0xff]  }
 0x177   :  { %v344_v21 = vadd.f32 %v343_v20, %v166_v13  ;;  %v349_v24 = vmax.f32 %v340_v17, 0.0  ;;  %1857 = vmatpush3.bf16.msra.mxu0 %v1952_v29  ;;  %v1966_v13 = vld [vmem:[%s2826_s9 + $0x24] ss:$16 sps:$4 sm:$0xff]   ;;  %v1970_v17 = vld [vmem:[%s2826_s9 + $0x40] ss:$16 sps:$4 sm:$0xff]  }
 0x178   :  { %v352_v23 = vmax.f32 %v342_v19, 0.0  ;;  %1858 = vmatprep.subr.bf16.mxu0 %v2254_v50  ;;  %v1981_v19 = vld [vmem:[%s2826_s9 + $0x6c] ss:$16 sps:$4 sm:$0xff]   ;;  %v1976_v20 = vld [vmem:[%s2826_s9 + $0x60] ss:$16 sps:$4 sm:$0xff]  }
 0x179   :  { %v353_v25 = vmax.f32 %v344_v21, 0.0  ;;  %v1979_v21 = vld [vmem:[%s2826_s9 + $0x68] ss:$16 sps:$4 sm:$0xff]  }
 0x17a   :  { %v356_v26 = vpack.c.bf16 %v352_v23, %v348_v22  ;;  %v1984_v22 = vld [vmem:[%s2826_s9 + $0x84] ss:$16 sps:$4 sm:$0xff]   ;;  %v1987_v23 = vld [vmem:[%s2826_s9 + $0x8c] ss:$16 sps:$4 sm:$0xff]   ;;  %v1991_v29 = vld [vmem:[%s2826_s9 + $0xa8] ss:$16 sps:$4 sm:$0xff]  }
 0x17b   :  { %v357_v27 = vpack.c.bf16 %v353_v25, %v349_v24  ;;  %1859 = vmatpush3.bf16.msra.mxu0 %v1953_v30  ;;  %v1982_v24 = vld [vmem:[%s2826_s9 + $0x80] ss:$16 sps:$4 sm:$0xff]   ;;  %v1985_v25 = vld [vmem:[%s2826_s9 + $0x88] ss:$16 sps:$4 sm:$0xff]   ;;  %v1996_v30 = vld [vmem:[%s2826_s9 + $0xc4] ss:$16 sps:$4 sm:$0xff]  }
 0x17c   :  { %1860 = vmatprep.subr.bf16.mxu0 %v2254_v50 }
 0x17d   :  { %694 = vmatprep.mubr.bf16.mxu1 %v357_v27  ;;  %v1993_v27 = vld [vmem:[%s2826_s9 + $0xac] ss:$16 sps:$4 sm:$0xff]  }
 0x17e   :  { %695 = vmatmul.mubr.bf16.vlgmr.msra.gmra.mrb[8].mxu1 %v356_v26  ;;  %v1990_v26 = vld [vmem:[%s2826_s9 + $0xa4] ss:$16 sps:$4 sm:$0xff]  }
 0x17f   :  { %1861 = vmatpush3.bf16.msra.mxu0 %v1954_v31  ;;  %1874 = vmatprep.mubr.msk.bf16.mxu1 %vm2255_vm1, %v2254_v50  ;;  %v1999_v31 = vld [vmem:[%s2826_s9 + $0xcc] ss:$16 sps:$4 sm:$0xff]  }
 0x180   :  { %1862 = vmatprep.subr.bf16.mxu0 %v2254_v50  ;;  %1873 = vmatpush3.bf16.msra.mxu1 %v836_v36  ;;  %v2000_v36 = vld [vmem:[%s2826_s9 + $0xe0] ss:$16 sps:$4 sm:$0xff]  }
 0x181   :  { %1106 = vmatprep.subr.bf16.mxu1 %v1960_v60  ;;  %v2008_v60 = vld [vmem:[%s2828_s11] sm:$0xff]  }
 0x183   :  { %1863 = vmatpush3.bf16.msra.mxu0 %v1955_v32  ;;  %v1994_v32 = vld [vmem:[%s2826_s9 + $0xc0] ss:$16 sps:$4 sm:$0xff]  }
 0x184   :  { %1864 = vmatprep.subr.bf16.mxu0 %v2254_v50 }
 0x187   :  { %1865 = vmatpush3.bf16.msra.mxu0 %v1956_v33  ;;  %v1997_v33 = vld [vmem:[%s2826_s9 + $0xc8] ss:$16 sps:$4 sm:$0xff]  }
 0x188   :  { %1866 = vmatprep.subr.bf16.mxu0 %v2254_v50 }
 0x18b   :  { %1867 = vmatpush3.bf16.msra.mxu0 %v1957_v34  ;;  %v2002_v34 = vld [vmem:[%s2826_s9 + $0xe4] ss:$16 sps:$4 sm:$0xff]  }
 0x18c   :  { %1149 = vmatprep.subr.bf16.mxu0 %v1963_v62 }
 0x241   :  { %v1769_v37 = vpop.f32.mrb[0].mxu0 }
 0x242   :  { %v1770_v38 = vpop.f32.mrb[1].mxu0 }
 0x243   :  { %v1771_v39 = vadd.f32 %v1770_v38, %v1769_v37  ;;  %v1772_v40 = vpop.f32.mrb[2].mxu0  ;;  %v2003_v37 = vld [vmem:[%s2826_s9 + $0xe8] ss:$16 sps:$4 sm:$0xff]   ;;  %v2006_v38 = vld [vmem:[%s2828_s11 + $0x40] sm:$0xff]  }
 0x244   :  { %v1773_v41 = vpop.f32.mrb[3].mxu0 }
 0x245   :  { %v1774_v42 = vadd.f32 %v1773_v41, %v1772_v40  ;;  %v656_v46 = vadd.f32 %v1771_v39, %v1634_v43  ;;  %v2007_v39 = vld [vmem:[%s2828_s11 + $0xc0] sm:$0xff]   ;;  %v1676_v40 = vld [vmem:[#allocation10] ss:$0 sm:$0xff] }
 0x247   :  { %v659_v50 = vadd.f32 %v1774_v42, %v1634_v43 }
 0x251   :  { %v1791_v44 = vpop.f32.mrb[8].mxu1 }
 0x252   :  { %v1792_v45 = vpop.f32.mrb[9].mxu1 }
 0x253   :  { %v1793_v47 = vadd.f32 %v1792_v45, %v1791_v44  ;;  %v1794_v48 = vpop.f32.mrb[10].mxu1 }
 0x254   :  { %v1795_v49 = vpop.f32.mrb[11].mxu1 }
 0x255   :  { %v697_v51 = vadd.f32 %v1793_v47, %v656_v46  ;;  %v1796_v54 = vadd.f32 %v1795_v49, %v1794_v48 }
 0x257   :  { %v700_v56 = vadd.f32 %v1796_v54, %v659_v50  ;;  %v703_v57 = vmax.f32 %v697_v51, 0.0 }
 0x259   :  { %v704_v58 = vmax.f32 %v700_v56, 0.0 }
 0x25b   :  { %v705_v59 = vpack.c.bf16 %v704_v58, %v703_v57 }
 0x25d   :  { %1869 = vmatmul.mubr.bf16.vlgmr.msra.gmra.mrb[4].mxu0 %v705_v59 }
 0x25e   :  { %1181 = vmatprep.mubr.bf16.mxu0 %v2253_v0  ;;  %1150 = vmatpush1.bf16.msra.mxu0 %v1961_v61  ;;  %v2009_v61 = vld [vmem:[%s2828_s11 + $0x80] sm:$0xff]  }
 0x25f   :  { %1151 = vmatprep.subr.bf16.mxu0 %v1969_v63  ;;  %v2010_v63 = vld [vmem:[%s2828_s11 + $0x48] sm:$0xff]  }
 0x262   :  { %1152 = vmatpush1.bf16.msra.mxu0 %v1967_v1  ;;  %v2011_v1 = vld [vmem:[%s2828_s11 + $0xc8] sm:$0xff]  }
 0x263   :  { %1153 = vmatprep.subr.bf16.mxu0 %v1975_v16  ;;  %v2024_v16 = vld [vmem:[%s2828_s11 + $0x20] sm:$0xff]  }
 0x266   :  { %1154 = vmatpush1.bf16.msra.mxu0 %v1973_v18  ;;  %v2026_v18 = vld [vmem:[%s2828_s11 + $0x68] sm:$0xff]  }
 0x267   :  { %1155 = vmatprep.subr.bf16.mxu0 %v1981_v19  ;;  %v2028_v19 = vld [vmem:[%s2828_s11 + $0x28] sm:$0xff]  }
 0x26a   :  { %1156 = vmatpush1.bf16.msra.mxu0 %v1979_v21  ;;  %v2030_v21 = vld [vmem:[%s2828_s11 + $0x70] sm:$0xff]  }
 0x26b   :  { %1157 = vmatprep.subr.bf16.mxu0 %v1987_v23  ;;  %v2032_v23 = vld [vmem:[%s2828_s11 + $0x30] sm:$0xff]  }
 0x26e   :  { %1158 = vmatpush1.bf16.msra.mxu0 %v1985_v25  ;;  %v2034_v25 = vld [vmem:[%s2828_s11 + $0x78] sm:$0xff]  }
 0x26f   :  { %1159 = vmatprep.subr.bf16.mxu0 %v1993_v27  ;;  %v2036_v27 = vld [vmem:[%s2828_s11 + $0x38] sm:$0xff]  }
 0x272   :  { %1160 = vmatpush1.bf16.msra.mxu0 %v1991_v29  ;;  %v924_v29 = vld [vmem:[#allocation11] sm:$0xf] }
 0x273   :  { %1161 = vmatprep.subr.bf16.mxu0 %v1999_v31  ;;  %v937_v31 = vrot.slane %v924_v29, %v161_v10 }
 0x276   :  { %1162 = vmatpush1.bf16.msra.mxu0 %v1997_v33  ;;  %v941_v33 = vrot.slane %v924_v29, %v165_v11 }
 0x277   :  { %1163 = vmatprep.subr.bf16.mxu0 %v2005_v35 }
 0x27a   :  { %1164 = vmatpush1.bf16.msra.mxu0 %v2003_v37 }
 0x27b   :  { %1830 = vmatprep.subr.bf16.mxu0 %v2007_v39 }
 0x330   :  { %v811_v3 = vpop.f32.mrb[4].mxu0 }
 0x331   :  { %v812_v4 = vadd.f32 %v1667_v2, %v811_v3  ;;  %v1870_v5 = vpop.f32.mrb[5].mxu0  ;;  %v2013_v3 = vld [vmem:[%s2828_s11 + $0x88] sm:$0xff]  }
 0x332   :  { %v814_v6 = vpop.f32.mrb[6].mxu0  ;;  %v2015_v5 = vld [vmem:[%s2828_s11 + $0xd0] sm:$0xff]  }
 0x333   :  { %819 = vst.msk [vmem:[%s2831_s14] sm:$0xff] %vm818_vm3, %v812_v4  ;;  %v815_v7 = vadd.f32 %v1667_v2, %v814_v6  ;;  %v1871_v8 = vpop.f32.mrb[7].mxu0  ;;  %v2012_v2 = vld [vmem:[%s2828_s11 + $0x8] sm:$0xff]   ;;  %v2016_v6 = vld [vmem:[%s2828_s11 + $0x10] sm:$0xff]  }
 0x334   :  { %v2018_v8 = vld [vmem:[%s2828_s11 + $0x58] sm:$0xff]  }
 0x335   :  { %820 = vst.msk [vmem:[%s2831_s14 + $0x8] sm:$0xff] %vm818_vm3, %v815_v7  ;;  %v821_v12 = vpack.c.bf16 %v815_v7, %v812_v4  ;;  %v2014_v4 = vld [vmem:[%s2828_s11 + $0x50] sm:$0xff]  }
 0x336   :  { %v2017_v7 = vld [vmem:[%s2828_s11 + $0x90] sm:$0xff]  }
 0x337   :  { %1875 = vmatmul.mubr.msk.bf16.vlgmr.msra.gmra.mrb[12].mxu1 %vm830_vm4, %v821_v12  ;;  %v2020_v12 = vld [vmem:[%s2828_s11 + $0x18] sm:$0xff]  }
 0x338   :  { %1107 = vmatpush1.bf16.msra.mxu1 %v1958_v9  ;;  %1138 = vmatprep.mubr.bf16.mxu1 %v2253_v0  ;;  %v1978_v0 = vld [vmem:[%s2826_s9 + $0x64] ss:$16 sps:$4 sm:$0xff]   ;;  %v2019_v9 = vld [vmem:[%s2828_s11 + $0xd8] sm:$0xff]  }
 0x339   :  { %1108 = vmatprep.subr.bf16.mxu1 %v1966_v13  ;;  %v2021_v13 = vld [vmem:[%s2828_s11 + $0x98] sm:$0xff]  }
 0x33c   :  { %1109 = vmatpush1.bf16.msra.mxu1 %v1964_v14  ;;  %v2022_v14 = vld [vmem:[%s2828_s11 + $0x60] sm:$0xff]  }
 0x33d   :  { %1110 = vmatprep.subr.bf16.mxu1 %v1972_v15  ;;  %v2023_v15 = vld [vmem:[%s2828_s11 + $0xe0] sm:$0xff]  }
 0x340   :  { %1111 = vmatpush1.bf16.msra.mxu1 %v1970_v17  ;;  %v2025_v17 = vld [vmem:[%s2828_s11 + $0xa0] sm:$0xff]  }
 0x341   :  { %1112 = vmatprep.subr.bf16.mxu1 %v1978_v0  ;;  %v2027_v0 = vld [vmem:[%s2828_s11 + $0xe8] sm:$0xff]  }
 0x344   :  { %1113 = vmatpush1.bf16.msra.mxu1 %v1976_v20  ;;  %v2029_v20 = vld [vmem:[%s2828_s11 + $0xa8] sm:$0xff]  }
 0x345   :  { %1114 = vmatprep.subr.bf16.mxu1 %v1984_v22  ;;  %v2031_v22 = vld [vmem:[%s2828_s11 + $0xf0] sm:$0xff]  }
 0x348   :  { %1115 = vmatpush1.bf16.msra.mxu1 %v1982_v24  ;;  %v2033_v24 = vld [vmem:[%s2828_s11 + $0xb0] sm:$0xff]  }
 0x349   :  { %1116 = vmatprep.subr.bf16.mxu1 %v1990_v26  ;;  %v2035_v26 = vld [vmem:[%s2828_s11 + $0xf8] sm:$0xff]  }
 0x34c   :  { %1117 = vmatpush1.bf16.msra.mxu1 %v1988_v28  ;;  %v2037_v28 = vld [vmem:[%s2828_s11 + $0xb8] sm:$0xff]   ;;  %s2256_s11 = smov [#allocation14]  }
 0x34d   :  { %1118 = vmatprep.subr.bf16.mxu1 %v1996_v30  ;;  %v929_v30 = vrot.slane %v924_v29, %v153_v53  ;;  %s1596_s22 = sshll.u32 %s2256_s11, 4  ;;  %s1597_s22 = int_to_ptr.vmem [resolvable:$true] %s1596_s22 }
 0x34e   :  { %s2212_s27 = scalar_lea.vmem %s1597_s22, 256  ;;  %p2217_p1 = scmp.lt.s32.totalorder %s1597_s22, %s1597_s22 }
 0x34f   :  { %p2213_p0 = scmp.ne.s32.totalorder %s1597_s22, %s2212_s27  ;;  %p2218_p2 = scmp.lt.s32.totalorder %s2212_s27, %s2212_s27 }
 0x350   :  { %1119 = vmatpush1.bf16.msra.mxu1 %v1994_v32  ;;  %v933_v32 = vrot.slane %v924_v29, %v157_v55 }
 0x351   :  { %1120 = vmatprep.subr.bf16.mxu1 %v2002_v34  ;;  %p2219_p3 = por %p2218_p2, %p2217_p1 }
 0x353   :  { %p2220_p4 = pnand %p2219_p3, %p2213_p0 }
 0x354   :  { %1121 = vmatpush1.bf16.msra.mxu1 %v2000_v36 }
 0x355   :  { %1808 = vmatprep.subr.bf16.mxu1 %v2006_v38 }
 0x40a   :  { %v872_v41 = vpop.f32.mrb[12].mxu1 }
 0x40b   :  { %v873_v42 = vadd.f32 %v1676_v40, %v872_v41  ;;  %v1876_v43 = vpop.f32.mrb[13].mxu1 }
 0x40c   :  { %v875_v44 = vpop.f32.mrb[14].mxu1 }
 0x40d   :  { %v881_v45 = vmin.f32 %v873_v42, 0.0  ;;  %v876_v46 = vadd.f32 %v1676_v40, %v875_v44  ;;  %v1877_v47 = vpop.f32.mrb[15].mxu1  ;;  %vm879_vm5 = vcmp.gt.f32.partialorder %v873_v42, 0.0 }
 0x40f   :  { %v883_v48 = vmul.f32 1.442695, %v881_v45  ;;  %v882_v49 = vmin.f32 %v876_v46, 0.0  ;;  %vm880_vm6 = vcmp.gt.f32.partialorder %v876_v46, 0.0 }
 0x411   :  { %2038 = vpow2.f32 %v883_v48  ;;  %v885_v50 = vmul.f32 1.442695, %v882_v49 }
 0x413   :  { %2040 = vpow2.f32 %v885_v50 }
 0x41b   :  { %v2039_v51 = vpop.eup %2038 }
 0x41c   :  { %v1678_v54 = vadd.f32 -1.0, %v2039_v51 }
 0x41d   :  { %v2041_v56 = vpop.eup %2040 }
 0x41e   :  { %v1679_v57 = vadd.f32 -1.0, %v2041_v56  ;;  %v889_v58 = vsel %vm879_vm5, %v873_v42, %v1678_v54 }
 0x420   :  { %v890_v59 = vsel %vm880_vm6, %v876_v46, %v1679_v57 }
 0x421   :  { %v891_v62 = vpack.c.bf16 %v890_v59, %v889_v58 }
 0x423   :  { %1139 = vmatmul.mubr.bf16.vlgmr.msra.gmra.mrb[16].mxu1 %v891_v62  ;;  %1182 = vmatmul.mubr.bf16.vlgmr.msra.gmra.mrb[8].mxu0 %v891_v62 }
 0x424   :  { %1809 = vmatpush3.bf16.msra.mxu1 %v2008_v60  ;;  %1831 = vmatpush3.bf16.msra.mxu0 %v2009_v61 }
 0x425   :  { %1810 = vmatprep.subr.bf16.mxu1 %v2010_v63  ;;  %1832 = vmatprep.subr.bf16.mxu0 %v2011_v1 }
 0x428   :  { %1811 = vmatpush3.bf16.msra.mxu1 %v2012_v2  ;;  %1833 = vmatpush3.bf16.msra.mxu0 %v2013_v3 }
 0x429   :  { %1812 = vmatprep.subr.bf16.mxu1 %v2014_v4  ;;  %1834 = vmatprep.subr.bf16.mxu0 %v2015_v5 }
 0x42c   :  { %1813 = vmatpush3.bf16.msra.mxu1 %v2016_v6  ;;  %1835 = vmatpush3.bf16.msra.mxu0 %v2017_v7 }
 0x42d   :  { %1814 = vmatprep.subr.bf16.mxu1 %v2018_v8  ;;  %1836 = vmatprep.subr.bf16.mxu0 %v2019_v9 }
 0x430   :  { %1815 = vmatpush3.bf16.msra.mxu1 %v2020_v12  ;;  %1837 = vmatpush3.bf16.msra.mxu0 %v2021_v13 }
 0x431   :  { %1816 = vmatprep.subr.bf16.mxu1 %v2022_v14  ;;  %1838 = vmatprep.subr.bf16.mxu0 %v2023_v15 }
 0x434   :  { %1817 = vmatpush3.bf16.msra.mxu1 %v2024_v16  ;;  %1839 = vmatpush3.bf16.msra.mxu0 %v2025_v17 }
 0x435   :  { %1818 = vmatprep.subr.bf16.mxu1 %v2026_v18  ;;  %1840 = vmatprep.subr.bf16.mxu0 %v2027_v0 }
 0x438   :  { %1819 = vmatpush3.bf16.msra.mxu1 %v2028_v19  ;;  %1841 = vmatpush3.bf16.msra.mxu0 %v2029_v20 }
 0x439   :  { %1820 = vmatprep.subr.bf16.mxu1 %v2030_v21  ;;  %1842 = vmatprep.subr.bf16.mxu0 %v2031_v22 }
 0x43c   :  { %1821 = vmatpush3.bf16.msra.mxu1 %v2032_v23  ;;  %1843 = vmatpush3.bf16.msra.mxu0 %v2033_v24 }
 0x43d   :  { %1822 = vmatprep.subr.bf16.mxu1 %v2034_v25  ;;  %1844 = vmatprep.subr.bf16.mxu0 %v2035_v26 }
 0x440   :  { %1823 = vmatpush3.bf16.msra.mxu1 %v2036_v27  ;;  %1845 = vmatpush3.bf16.msra.mxu0 %v2037_v28 }
 0x4f6   :  { %v1140_v34 = vpop.f32.mrb[16].mxu1  ;;  %v1183_v35 = vpop.f32.mrb[8].mxu0 }
 0x4f7   :  { %v1141_v36 = vadd.f32 %v1140_v34, %v929_v30  ;;  %v1184_v37 = vadd.f32 %v1183_v35, %v937_v31  ;;  %v1142_v38 = vpop.f32.mrb[17].mxu1  ;;  %v1185_v39 = vpop.f32.mrb[9].mxu0 }
 0x4f8   :  { %v2788_v40 = vadd.f32 %v1142_v38, %v933_v32  ;;  %v2790_v41 = vadd.f32 %v1185_v39, %v941_v33  ;;  %v1144_v53 = vpop.f32.mrb[18].mxu1  ;;  %v1187_v42 = vpop.f32.mrb[10].mxu0 }
 0x4f9   :  { %v1200_v43 = vmin.f32 %v1141_v36, 0.0  ;;  %v1202_v10 = vmin.f32 %v1184_v37, 0.0  ;;  %v1146_v44 = vpop.f32.mrb[19].mxu1  ;;  %v1189_v45 = vpop.f32.mrb[11].mxu0  ;;  %v1145_v47 = vadd.f32 %v1144_v53, %v929_v30  ;;  %v1188_v48 = vadd.f32 %v1187_v42, %v937_v31 }
 0x4fa   :  { %v1201_v55 = vmin.f32 %v2788_v40, 0.0  ;;  %v1203_v52 = vmin.f32 %v2790_v41, 0.0  ;;  %v1147_v51 = vadd.f32 %v1146_v44, %v933_v32  ;;  %v1190_v54 = vadd.f32 %v1189_v45, %v941_v33  ;;  %v1720_v32 = vld [vmem:[#allocation13] ss:$0 sm:$0xff] }
 0x4fb   :  { %v1208_v11 = vmul.f32 1.442695, %v1200_v43  ;;  %v1212_v46 = vmul.f32 1.442695, %v1202_v10  ;;  %v1204_v56 = vmin.f32 %v1145_v47, 0.0  ;;  %v1206_v57 = vmin.f32 %v1188_v48, 0.0 }
 0x4fc   :  { %v1210_v49 = vmul.f32 1.442695, %v1201_v55  ;;  %v1214_v50 = vmul.f32 1.442695, %v1203_v52  ;;  %v1205_v58 = vmin.f32 %v1147_v51, 0.0  ;;  %v1207_v60 = vmin.f32 %v1190_v54, 0.0 }
 0x4fd   :  { %2042 = vpow2.f32 %v1208_v11  ;;  %v1216_v59 = vmul.f32 1.442695, %v1204_v56  ;;  %v1220_v61 = vmul.f32 1.442695, %v1206_v57  ;;  %vm1192_vm7 = vcmp.gt.f32.partialorder %v1141_v36, 0.0 }
 0x4fe   :  { %2044 = vpow2.f32 %v1212_v46  ;;  %v1218_v62 = vmul.f32 1.442695, %v1205_v58  ;;  %v1222_v63 = vmul.f32 1.442695, %v1207_v60  ;;  %vm1194_vm8 = vcmp.gt.f32.partialorder %v1184_v37, 0.0 }
 0x4ff   :  { %2046 = vpow2.f32 %v1210_v49  ;;  %vm1193_vm9 = vcmp.gt.f32.partialorder %v2788_v40, 0.0  ;;  %vm1195_vm10 = vcmp.gt.f32.partialorder %v2790_v41, 0.0  ;;  %vm1196_vm11 = vcmp.gt.f32.partialorder %v1145_v47, 0.0 }
 0x500   :  { %2048 = vpow2.f32 %v1214_v50  ;;  %vm1198_vm12 = vcmp.gt.f32.partialorder %v1188_v48, 0.0  ;;  %vm1197_vm13 = vcmp.gt.f32.partialorder %v1147_v51, 0.0  ;;  %vm1199_vm14 = vcmp.gt.f32.partialorder %v1190_v54, 0.0 }
 0x501   :  { %2050 = vpow2.f32 %v1216_v59 }
 0x502   :  { %2052 = vpow2.f32 %v1220_v61 }
 0x503   :  { %2054 = vpow2.f32 %v1218_v62 }
 0x504   :  { %2056 = vpow2.f32 %v1222_v63 }
 0x507   :  { %v2043_v1 = vpop.eup %2042 }
 0x508   :  { %v2045_v2 = vpop.eup %2044  ;;  %v1712_v5 = vadd.f32 -1.0, %v2043_v1 }
 0x509   :  { %v2047_v3 = vpop.eup %2046  ;;  %v1714_v7 = vadd.f32 -1.0, %v2045_v2 }
 0x50a   :  { %v2049_v4 = vpop.eup %2048  ;;  %v1713_v9 = vadd.f32 -1.0, %v2047_v3  ;;  %v1232_v17 = vsel %vm1192_vm7, %v1141_v36, %v1712_v5 }
 0x50b   :  { %v2051_v6 = vpop.eup %2050  ;;  %v1715_v14 = vadd.f32 -1.0, %v2049_v4  ;;  %v1234_v19 = vsel %vm1194_vm8, %v1184_v37, %v1714_v7 }
 0x50c   :  { %v2053_v8 = vpop.eup %2052  ;;  %v1716_v12 = vadd.f32 -1.0, %v2051_v6  ;;  %v1233_v24 = vsel %vm1193_vm9, %v2788_v40, %v1713_v9 }
 0x50d   :  { %v2055_v13 = vpop.eup %2054  ;;  %v1718_v15 = vadd.f32 -1.0, %v2053_v8  ;;  %v1235_v27 = vsel %vm1195_vm10, %v2790_v41, %v1715_v14 }
 0x50e   :  { %v2057_v16 = vpop.eup %2056  ;;  %v1236_v18 = vsel %vm1196_vm11, %v1145_v47, %v1716_v12  ;;  %v1717_v0 = vadd.f32 -1.0, %v2055_v13 }
 0x50f   :  { %v1240_v20 = vpack.c.bf16 %v1236_v18, %v1232_v17  ;;  %v1238_v21 = vsel %vm1198_vm12, %v1188_v48, %v1718_v15  ;;  %v1719_v22 = vadd.f32 -1.0, %v2057_v16 }
 0x510   :  { %v1242_v23 = vpack.c.bf16 %v1238_v21, %v1234_v19  ;;  %v1237_v25 = vsel %vm1197_vm13, %v1147_v51, %v1717_v0 }
 0x511   :  { %v1241_v26 = vpack.c.bf16 %v1237_v25, %v1233_v24  ;;  %v1239_v28 = vsel %vm1199_vm14, %v1190_v54, %v1719_v22 }
 0x512   :  { %v1243_v29 = vpack.c.bf16 %v1239_v28, %v1235_v27 }
 0x513   :  { %1539 = vmatprep.mubr.bf16.mxu1 %v1241_v26 }
 0x514   :  { %1580 = vmatprep.mubr.bf16.mxu0 %v1243_v29  ;;  %1540 = vmatmul.mubr.bf16.vlgmr.msra.gmra.mrb[20].mxu1 %v1240_v20 }
 0x515   :  { %1581 = vmatmul.mubr.bf16.vlgmr.msra.gmra.mrb[12].mxu0 %v1242_v23 }
 0x5e7   :  { %v1824_v30 = vpop.f32.mrb[20].mxu1 }
 0x5e8   :  { %v1846_v31 = vpop.f32.mrb[12].mxu0  ;;  %v1825_v33 = vpop.f32.mrb[21].mxu1 }
 0x5e9   :  { %v1826_v34 = vadd.f32 %v1825_v33, %v1824_v30  ;;  %v1847_v35 = vpop.f32.mrb[13].mxu0  ;;  %v1827_v36 = vpop.f32.mrb[22].mxu1 }
 0x5ea   :  { %v1848_v37 = vadd.f32 %v1847_v35, %v1846_v31  ;;  %v1849_v38 = vpop.f32.mrb[14].mxu0  ;;  %v1828_v39 = vpop.f32.mrb[23].mxu1 }
 0x5eb   :  { %v1542_v40 = vadd.f32 %v1826_v34, %v1720_v32  ;;  %v1829_v53 = vadd.f32 %v1828_v39, %v1827_v36  ;;  %v1850_v42 = vpop.f32.mrb[15].mxu0 }
 0x5ec   :  { %v1851_v41 = vadd.f32 %v1850_v42, %v1849_v38 }
 0x5ed   :  { %v1583_v43 = vadd.f32 %v1848_v37, %v1542_v40  ;;  %v1545_v10 = vadd.f32 %v1829_v53, %v1720_v32 }
 0x5ef   :  { %1589 = vst.msk [vmem:[#allocation14] sm:$0xff] %vm256_vm0, %v1583_v43  ;;  %v1586_v44 = vadd.f32 %v1851_v41, %v1545_v10 }
 0x5f1   :  { %1590 = vst.msk [vmem:[#allocation14 + $0x8] sm:$0xff] %vm256_vm0, %v1586_v44 }
 0x5f2   :  { %2223 = shalt.err (!%p2220_p4)
}
 0x5f3   :  { %s2224_s17 = scalar_lea.hbm %s2830_s13, 256 }
 0x5f4   :  { %p2225_p5 = scmp.ne.s32.totalorder %s2830_s13, %s2224_s17  ;;  %p2228_p6 = scmp.lt.u32.totalorder %s2224_s17, %s2830_s13 }
 0x5f6   :  { %p2230_p7 = pnand %p2228_p6, %p2225_p5 }
 0x5f8   :  { %2233 = shalt.err (!%p2230_p7)
}
 0x5f9   :  { %s2257_s6 = smov 128   ;;  %s2258_s15 = smov 8  }
 0x5fa   :  { %1602 = dma.vmem_to_hbm [thread:$0]  %s1597_s22, 256, %s2830_s13, [#allocation4], %s2257_s6, %s2257_s6, %s2258_s15  }
 0x5fb   :  { %2242 = dma.done.wait [#allocation4], 256  }
 0x5fc   :  { %2243 = vsyncadd [#allocation4], 4294967040 }
 0x5fd   :  { %1610 = vsyncpa [#allocation3], 1 }
 0x5fe   :  { %1611 = vsyncpa [#allocation6], 1 }
 0x5ff   :  { %1612 = vsyncpa [#allocation9], 1 }
 0x600   :  { %1613 = vsyncpa [#allocation12], 1 }
 0x601   :  { %1614 = vsyncpa [#allocation4], 1 }

</bundles_post_ra>
